<compile_context>
chip_gen: v5e
topology: v5e:2x2
jax: 0.10.0
libtpu: 0.0.40
codegen_flags: <defaults>
</compile_context>

<pallas_src>
import functools

import jax
import jax.numpy as jnp
from jax.experimental import pallas as pl
from jax.experimental.pallas import tpu as pltpu

_MIB = 1024 * 1024


def _chip_info():
    """Returns (vmem_capacity_bytes, target_block_bytes, num_tensorcores)."""
    vmem_cap = 128 * _MIB
    try:
        vmem_cap = int(pltpu.get_tpu_info().vmem_capacity_bytes)
    except Exception:  # conservative fallback (v5e/v6e-like)
        pass
    small_vmem = vmem_cap <= 64 * _MIB       # v7x-like: 64 MiB per TensorCore
    num_tc = 2 if small_vmem else 1          # v7x has 2 TCs per chip
    target_block = (4 if small_vmem else 8) * _MIB
    return vmem_cap, target_block, num_tc


def _vmem_limit(block_bytes, vmem_cap):
    # 2 pipeline buffers x (input block + output block) + temporaries + margin.
    need = 4 * block_bytes + 16 * _MIB
    need = max(need, 32 * _MIB)
    return int(min(need, vmem_cap - 4 * _MIB))


def _sublane(dtype):
    """Packed sublane granularity: 8 (32-bit), 16 (16-bit), 32 (8-bit)."""
    return 8 * max(1, 4 // jnp.dtype(dtype).itemsize)


def _pad_lanes(xf, hw):
    """Pad folded lane dim (H*W) up to a multiple of 128 for dense stores."""
    hwp = -(-hw // 128) * 128
    if hwp != hw:
        xf = jnp.pad(xf, ((0, 0), (0, 0), (0, hwp - hw)))
    return xf, hwp


# ---------------------------------------------------------------------------
# Channel attention:  attn = sigmoid(global_avg_pool(x));  out = x * attn
# Kernel operates on (Bt, Ct, H*W_padded) lane-dense blocks in native dtype.
# ---------------------------------------------------------------------------
def _channel_attn_kernel(x_ref, o_ref, *, inv_hw):
    x = x_ref[...]                                          # native dtype
    # f32 accumulation of the true mean (zero-padded lanes do not change it).
    mean = jnp.sum(x, axis=-1, keepdims=True, dtype=jnp.float32) * inv_hw
    attn = jax.nn.sigmoid(mean).astype(x.dtype)             # (Bt, Ct, 1)
    o_ref[...] = (x * attn).astype(o_ref.dtype)


def channel_attention(x):
    B, C, H, W = x.shape
    HW = H * W
    itemsize = jnp.dtype(x.dtype).itemsize
    vmem_cap, target_block, num_tc = _chip_info()

    xf, HWp = _pad_lanes(x.reshape(B, C, HW), HW)           # free reshape + pad
    sub = _sublane(x.dtype)

    # Channel tile: full C if it fits the byte target, otherwise a multiple of
    # the dtype's packed-sublane granularity.  Ragged tails are handled by
    # cdiv grids (per-(b,c) math is independent, so masked tails are safe).
    per_c_bytes = HWp * itemsize
    if C * per_c_bytes <= target_block or C <= sub:
        Ct = C
    else:
        Ct = max(sub, (target_block // per_c_bytes) // sub * sub)
    grid_c = pl.cdiv(C, Ct)

    per_b_bytes = Ct * HWp * itemsize
    Bt = int(max(1, min(B, target_block // max(per_b_bytes, 1))))
    grid_b = pl.cdiv(B, Bt)

    # v7x only (2 TensorCores): keep at least 2 parallel blocks.
    if num_tc > 1 and grid_b * grid_c == 1:
        if B > 1:
            Bt = pl.cdiv(B, num_tc)
            grid_b = pl.cdiv(B, Bt)
        elif C > sub:
            Ct = max(sub, pl.cdiv(pl.cdiv(C, num_tc), sub) * sub)
            grid_c = pl.cdiv(C, Ct)

    block_bytes = Bt * Ct * HWp * itemsize
    out = pl.pallas_call(
        functools.partial(_channel_attn_kernel, inv_hw=1.0 / HW),
        out_shape=jax.ShapeDtypeStruct((B, C, HWp), x.dtype),
        grid=(grid_b, grid_c),
        in_specs=[pl.BlockSpec((Bt, Ct, HWp), lambda b, c: (b, c, 0))],
        out_specs=pl.BlockSpec((Bt, Ct, HWp), lambda b, c: (b, c, 0)),
        compiler_params=pltpu.CompilerParams(
            dimension_semantics=("parallel", "parallel"),
            vmem_limit_bytes=_vmem_limit(block_bytes, vmem_cap)),
    )(xf)
    if HWp != HW:
        out = out[:, :, :HW]
    return out.reshape(B, C, H, W)


# ---------------------------------------------------------------------------
# Spatial attention:
#   s = mean_C(x) + max_C(x);  attn = sigmoid(box7x7_zeropad(s) / 49)
# Computed on the folded (B, C, H*W_padded) layout.  The 7x7 box is separable;
# pltpu.roll provides the circular lane rotation and iota masks re-create the
# conv's zero padding (and keep W-shifts from crossing image rows).
# ---------------------------------------------------------------------------
def _spatial_attn_kernel(x_ref, o_ref, *, H, W, inv_c):
    x = x_ref[...]                                          # native (Bt, C, HWp)
    hwp = x.shape[-1]

    # avg + max over channels; sum accumulates in f32, max is exact.
    s = (jnp.sum(x, axis=1, dtype=jnp.float32) * inv_c
         + jnp.max(x, axis=1).astype(jnp.float32))          # (Bt, HWp) f32

    idx = jax.lax.broadcasted_iota(jnp.int32, s.shape, 1)
    col = idx % W
    row = idx // W

    # W direction: shifts of +-d, masked so they never cross an image row.
    box_w = s
    for d in range(1, min(4, W)):
        box_w = box_w + jnp.where(col >= d, pltpu.roll(s, d, 1), 0.0)
        box_w = box_w + jnp.where(col < W - d, pltpu.roll(s, hwp - d, 1), 0.0)

    # H direction: shifts of +-d rows; row masks emulate zero padding in H.
    box = box_w
    for d in range(1, min(4, H)):
        box = box + jnp.where(row >= d, pltpu.roll(box_w, d * W, 1), 0.0)
        box = box + jnp.where(row < H - d, pltpu.roll(box_w, hwp - d * W, 1), 0.0)

    attn = jax.nn.sigmoid(box * (1.0 / 49.0))               # (Bt, HWp) f32
    o_ref[...] = (x * attn[:, None, :].astype(x.dtype)).astype(o_ref.dtype)


def spatial_attention(x):
    B, C, H, W = x.shape
    HW = H * W
    itemsize = jnp.dtype(x.dtype).itemsize
    vmem_cap, target_block, num_tc = _chip_info()

    xf, HWp = _pad_lanes(x.reshape(B, C, HW), HW)           # free reshape + pad

    per_b_bytes = C * HWp * itemsize
    Bt = int(max(1, min(B, target_block // max(per_b_bytes, 1))))
    grid_b = pl.cdiv(B, Bt)
    # v7x only (2 TensorCores): keep at least 2 parallel blocks.
    if num_tc > 1 and grid_b == 1 and B > 1:
        Bt = pl.cdiv(B, num_tc)
        grid_b = pl.cdiv(B, Bt)
    # TODO(synk): for single images larger than the VMEM budget (e.g. C=256,
    # 128x128 f32 on v7x) tile H into row blocks with a +-3-row halo so B==1
    # still yields >=2 blocks and double-buffering is preserved.

    block_bytes = Bt * C * HWp * itemsize
    out = pl.pallas_call(
        functools.partial(_spatial_attn_kernel, H=H, W=W, inv_c=1.0 / C),
        out_shape=jax.ShapeDtypeStruct((B, C, HWp), x.dtype),
        grid=(grid_b,),
        in_specs=[pl.BlockSpec((Bt, C, HWp), lambda b: (b, 0, 0))],
        out_specs=pl.BlockSpec((Bt, C, HWp), lambda b: (b, 0, 0)),
        compiler_params=pltpu.CompilerParams(
            dimension_semantics=("parallel",),
            vmem_limit_bytes=_vmem_limit(block_bytes, vmem_cap)),
    )(xf)
    if HWp != HW:
        out = out[:, :, :HW]
    return out.reshape(B, C, H, W)


# ---------------------------------------------------------------------------
# Module-equivalent wrapper (no learnable parameters in the PyTorch module;
# the 7x7 conv weight is the fixed constant ones(1,2,7,7)/49).
# ---------------------------------------------------------------------------
def attention_mechanism(x, attention_type="channel"):
    if attention_type == "channel":
        return channel_attention(x)
    elif attention_type == "spatial":
        return spatial_attention(x)
    else:
        return x


# ---------------------------------------------------------------------------
# Pure-JAX references for correctness checking.
# ---------------------------------------------------------------------------
def _ref_channel(x):
    attn = jax.nn.sigmoid(jnp.mean(x, axis=(2, 3), keepdims=True))
    return x * attn


def _ref_spatial(x):
    avg = jnp.mean(x, axis=1, keepdims=True)
    mx = jnp.max(x, axis=1, keepdims=True)
    s = (avg + mx)[:, 0]                                    # (B, H, W)
    sp = jnp.pad(s, ((0, 0), (3, 3), (3, 3)))
    box = jnp.zeros_like(s)
    for dy in range(7):
        for dx in range(7):
            box = box + sp[:, dy:dy + s.shape[1], dx:dx + s.shape[2]]
    attn = jax.nn.sigmoid(box / 49.0)[:, None, :, :]
    return x * attn


if __name__ == "__main__":
    k0, k1 = jax.random.split(jax.random.PRNGKey(0))
    x1 = jax.random.normal(k0, (2, 4, 16, 16), dtype=jnp.float32)
    x2 = jax.random.normal(k1, (1, 3, 16, 128), dtype=jnp.float32)

    for x in (x1, x2):
        out_c = jax.block_until_ready(attention_mechanism(x, "channel"))
        out_s = jax.block_until_ready(attention_mechanism(x, "spatial"))

        ref_c = _ref_channel(x)
        ref_s = _ref_spatial(x)

        assert out_c.shape == x.shape and out_s.shape == x.shape
        assert jnp.allclose(out_c, ref_c, atol=1e-5, rtol=1e-5)
        assert jnp.allclose(out_s, ref_s, atol=1e-4, rtol=1e-4)

    print("KERNEL_OK")
</pallas_src>

<mosaic_0001>
module attributes {stable_mosaic.version = 11 : i64} {
  func.func @_channel_attn_kernel(%arg0: i32, %arg1: i32, %arg2: memref<2x4x256xf32, #tpu.memory_space<vmem>>, %arg3: memref<2x4x256xf32, #tpu.memory_space<vmem>>) attributes {dimension_semantics = [#tpu.dimension_semantics<parallel>, #tpu.dimension_semantics<parallel>], iteration_bounds = array<i64: 1, 1>, scalar_prefetch = 0 : i64, scratch_operands = 0 : i64, tpu.core_type = #tpu.core_type<tc>, window_params = [{transform_indices = @transform_0, window_bounds = array<i64: 2, 4, 256>}, {transform_indices = @transform_1, window_bounds = array<i64: 2, 4, 256>}]} {
    %c0 = arith.constant 0 : index
    %c0_0 = arith.constant 0 : index
    %c0_1 = arith.constant 0 : index
    %0 = vector.load %arg2[%c0, %c0_0, %c0_1] : memref<2x4x256xf32, #tpu.memory_space<vmem>>, vector<2x4x256xf32>
    %cst = arith.constant dense<0.000000e+00> : vector<2x4xf32>
    %1 = vector.multi_reduction <add>, %0, %cst [2] : vector<2x4x256xf32> to vector<2x4xf32>
    %2 = vector.shape_cast %1 : vector<2x4xf32> to vector<2x4x1xf32>
    %cst_2 = arith.constant 3.906250e-03 : f32
    %3 = vector.broadcast %cst_2 : f32 to vector<2x4x1xf32>
    %4 = arith.mulf %2, %3 : vector<2x4x1xf32>
    %5 = arith.negf %4 : vector<2x4x1xf32>
    %6 = math.exp %5 : vector<2x4x1xf32>
    %cst_3 = arith.constant 1.000000e+00 : f32
    %7 = vector.broadcast %cst_3 : f32 to vector<2x4x1xf32>
    %8 = arith.addf %7, %6 : vector<2x4x1xf32>
    %9 = arith.divf %7, %8 : vector<2x4x1xf32>
    %10 = vector.broadcast %9 : vector<2x4x1xf32> to vector<2x4x256xf32>
    %11 = arith.mulf %0, %10 : vector<2x4x256xf32>
    %c0_4 = arith.constant 0 : index
    %c0_5 = arith.constant 0 : index
    %c0_6 = arith.constant 0 : index
    %12 = vector.load %arg3[%c0_4, %c0_5, %c0_6] : memref<2x4x256xf32, #tpu.memory_space<vmem>>, vector<2x4x256xf32>
    tpu.vector_store %arg3[%c0_4, %c0_5, %c0_6], %11 {strides = array<i32>} : memref<2x4x256xf32, #tpu.memory_space<vmem>>, vector<2x4x256xf32>,
    return
  }
  func.func @transform_0(%arg0: i32, %arg1: i32) -> (i32, i32, i32) {
    %c0_i32 = arith.constant 0 : i32
    %c0_i32_0 = arith.constant 0 : i32
    return %arg0, %arg1, %c0_i32 : i32, i32, i32
  }
  func.func @transform_1(%arg0: i32, %arg1: i32) -> (i32, i32, i32) {
    %c0_i32 = arith.constant 0 : i32
    %c0_i32_0 = arith.constant 0 : i32
    return %arg0, %arg1, %c0_i32 : i32, i32, i32
  }
}

</mosaic_0001>

<bundles_post_ra>
// kernel: tpu_custom_call.1
= control target key start
LH: loop header
LB: loop body
LE: loop exit
PB: predicated region body
PF: predicated region fallthrough
CT: control target
= control target key end

     0   :  { %6 = vsyncpa [#allocation3], 0  ;;  %s224_s0 = inlined_call_operand.hbm [shape: f32[2,4,256], index: 0, kind: input, shape index: {}]   ;;  %s225_s1 = inlined_call_operand.hbm [shape: f32[2,4,256], index: 1, kind: output, shape index: {}]  }
   0x1   :  { %7 = vsyncpa [#allocation4], 0  ;;  %s12_s8 = sshll.u32 %s224_s0, 4  ;;  %s193_s9 = smov [#allocation2]   ;;  %s13_s8 = int_to_ptr.hbm [resolvable:$true] %s12_s8 }
   0x2   :  { %s14_s10 = sshll.u32 %s193_s9, 4  ;;  %s194_s11 = smov 128   ;;  %s15_s10 = int_to_ptr.vmem [resolvable:$true] %s14_s10 }
   0x3   :  { %s195_s12 = smov 8  }
   0x4   :  { %20 = dma.hbm_to_vmem [thread:$0]  %s13_s8, 256, %s15_s10, [#allocation3], %s194_s11, %s194_s11, %s195_s12  }
   0x5   :  { %189 = dma.done.wait [#allocation3], 256  }
   0x6   :  { %190 = vsyncadd [#allocation3], 4294967040  ;;  %v25_v0 = vld [vmem:[#allocation2] sm:$0xff]  ;;  %v214_v1 = vld [vmem:[#allocation2 + $0x8] sm:$0xff]  ;;  %vm40_vm0 = vcmask 1043456   ;;  %s197_s0 = smov [#allocation5]  }
   0x7   :  { %29 = vst [vmem:[#allocation1] ss:$2 sm:$0xff] %v25_v0  ;;  %v196_v25 = vmov 839922192   ;;  %s111_s13 = sshll.u32 %s197_s0, 4  ;;  %s113_s16 = sshll.u32 %s225_s1, 4  ;;  %s112_s13 = int_to_ptr.vmem [resolvable:$true] %s111_s13  ;;  %s114_s16 = int_to_ptr.hbm [resolvable:$true] %s113_s16 }
   0x8   :  { %33 = vst [vmem:[#allocation1 + $0x10] ss:$2 sm:$0xff] %v214_v1  ;;  %v94_v26 = vunpack.c.l.s4 %v196_v25 }
   0xa   :  { %v95_v31 = vunpack.c.0.s8 %v94_v26 }
   0xe   :  { %v30_v2 = vld.sshfl [vmem:[#allocation1] sm:$0xff pattern:$0x75316420]  ;;  %v31_v3 = vld.sshfl [vmem:[#allocation1 + $0x8] sm:$0xff pattern:$0x75316420] }
   0xf   :  { %v41_v4 = vsel %vm40_vm0, %v30_v2, 0.0  ;;  %v42_v5 = vsel %vm40_vm0, %v31_v3, 0.0  ;;  %v34_v7 = vld.sshfl [vmem:[#allocation1 + $0x10] sm:$0xff pattern:$0x75316420] }
  0x10   :  { %v43_v6 = vadd.f32 %v42_v5, %v41_v4  ;;  %v35_v8 = vld.sshfl [vmem:[#allocation1 + $0x18] sm:$0xff pattern:$0x75316420]  ;;  %v46_v9 = vsel %vm40_vm0, %v34_v7, 0.0 }
  0x11   :  { %v47_v10 = vsel %vm40_vm0, %v35_v8, 0.0 }
  0x12   :  { %44 = vadd.xlane.f32.xlu0 %v43_v6  ;;  %v48_v11 = vadd.f32 %v47_v10, %v46_v9 }
  0x1a   :  { %49 = vadd.xlane.f32.xlu0 %v48_v11 }
  0x85   :  { %v45_v12 = vpop.xlane.xlu0 %44 }
  0x86   :  { %v126_v13 = vmul.f32 -0.00390625, %v45_v12 }
  0x88   :  { %v55_v14 = vmul.f32 1.442695, %v126_v13 }
  0x8a   :  { %133 = vpow2.f32 %v55_v14 }
  0x8d   :  { %v50_v15 = vpop.xlane.xlu0 %49 }
  0x8e   :  { %v127_v16 = vmul.f32 -0.00390625, %v50_v15 }
  0x90   :  { %v134_v17 = vpop.eup %133  ;;  %v57_v18 = vmul.f32 1.442695, %v127_v16 }
  0x91   :  { %v59_v19 = vadd.f32 1.0, %v134_v17 }
  0x92   :  { %135 = vpow2.f32 %v57_v18 }
  0x93   :  { %137 = vrcp.f32 %v59_v19  ;;  %v72_v27 = vand.u32 2147483648, %v59_v19  ;;  %v70_v29 = vand.u32 2147483647, %v59_v19  ;;  %vm66_vm2 = vweird.f32 %v59_v19 }
  0x95   :  { %v73_v33 = vor.u32 1.1754944e-38, %v72_v27  ;;  %vm71_vm4 = vcmp.eq.f32.partialorder %v70_v29, 8.507059e+37 }
  0x98   :  { %v136_v20 = vpop.eup %135 }
  0x99   :  { %v138_v21 = vpop.eup %137  ;;  %v60_v22 = vadd.f32 1.0, %v136_v20 }
  0x9a   :  { %v62_v23 = vmul.f32 %v138_v21, %v59_v19  ;;  %vm67_vm1 = vweird.f32 %v138_v21 }
  0x9b   :  { %139 = vrcp.f32 %v60_v22  ;;  %vm68_vm3 = vmor %vm66_vm2, %vm67_vm1  ;;  %v87_v39 = vand.u32 2147483648, %v60_v22  ;;  %v85_v41 = vand.u32 2147483647, %v60_v22  ;;  %vm81_vm6 = vweird.f32 %v60_v22 }
  0x9c   :  { %v63_v24 = vsub.f32 1.0, %v62_v23 }
  0x9d   :  { %v88_v44 = vor.u32 1.1754944e-38, %v87_v39  ;;  %vm86_vm8 = vcmp.eq.f32.partialorder %v85_v41, 8.507059e+37 }
  0x9e   :  { %v64_v28 = vmul.f32 %v138_v21, %v63_v24 }
  0xa0   :  { %v65_v30 = vadd.f32 %v138_v21, %v64_v28 }
  0xa1   :  { %v140_v32 = vpop.eup %139 }
  0xa2   :  { %v77_v34 = vmul.f32 %v140_v32, %v60_v22  ;;  %v69_v35 = vsel %vm68_vm3, %v138_v21, %v65_v30  ;;  %vm82_vm5 = vweird.f32 %v140_v32 }
  0xa3   :  { %v74_v36 = vsel %vm71_vm4, %v73_v33, %v69_v35  ;;  %vm83_vm7 = vmor %vm81_vm6, %vm82_vm5 }
  0xa4   :  { %v78_v37 = vsub.f32 1.0, %v77_v34  ;;  %v96_v38 = vperm.slane %v74_v36, %v95_v31 }
  0xa6   :  { %v79_v40 = vmul.f32 %v140_v32, %v78_v37  ;;  %v103_v42 = vmul.f32 %v96_v38, %v25_v0 }
  0xa8   :  { %v80_v43 = vadd.f32 %v140_v32, %v79_v40  ;;  %105 = vst [vmem:[#allocation5] sm:$0xff] %v103_v42 }
  0xaa   :  { %v84_v45 = vsel %vm83_vm7, %v140_v32, %v80_v43 }
  0xab   :  { %v89_v46 = vsel %vm86_vm8, %v88_v44, %v84_v45 }
  0xac   :  { %v100_v47 = vperm.slane %v89_v46, %v95_v31 }
  0xae   :  { %v104_v48 = vmul.f32 %v100_v47, %v214_v1 }
  0xb0   :  { %106 = vst [vmem:[#allocation5 + $0x8] sm:$0xff] %v104_v48 }
  0xb1   :  { %119 = dma.vmem_to_hbm [thread:$0]  %s112_s13, 256, %s114_s16, [#allocation4], %s194_s11, %s194_s11, %s195_s12  }
  0xb2   :  { %191 = dma.done.wait [#allocation4], 256  }
  0xb3   :  { %192 = vsyncadd [#allocation4], 4294967040 }
  0xb4   :  { %124 = vsyncpa [#allocation3], 1 }
  0xb5   :  { %125 = vsyncpa [#allocation4], 1 }

</bundles_post_ra>
